<compile_context>
chip_gen: v7x
topology: tpu7x:2x2x1
jax: 0.10.0
libtpu: 0.0.40
codegen_flags: <defaults>
</compile_context>

<pallas_src>
import functools

import jax
import jax.numpy as jnp
import numpy as np
from jax.experimental import pallas as pl
from jax.experimental.pallas import tpu as pltpu

EPS = 1e-6


def _vicreg_kernel(x_ref, hinge_ref, gram_ref, *,
                   tiles_per_core, tile_s, s_total, ragged):
    """Process one (B, tile_s, D) slab: accumulate per-core hinge row + Gram."""
    k = pl.program_id(1)

    @pl.when(k == 0)
    def _init():
        hinge_ref[...] = jnp.zeros_like(hinge_ref)
        gram_ref[...] = jnp.zeros_like(gram_ref)

    x_nat = x_ref[...]                                   # (B, ts, D), native dtype
    b, ts, d = x_nat.shape
    x = x_nat.astype(jnp.float32)

    # ---- std-hinge term: full batch visible per (s, d) feature -> two-pass
    # mean / centered-sum-of-squares is exact for this tile. ----
    mean = jnp.sum(x, axis=0, keepdims=True) * (1.0 / b)         # (1, ts, D)
    xc = x - mean
    var = jnp.sum(xc * xc, axis=0) * (1.0 / (b - 1))             # (ts, D), ddof=1
    std = jnp.sqrt(var + EPS)
    hinge = jnp.maximum(1.0 - std, 0.0)                          # relu(1 - std)

    if ragged:
        # S was zero-padded up to a tile multiple; padded rows contribute 0 to
        # the Gram automatically, but their hinge (relu(1 - sqrt(eps))) must be
        # masked out of the loss1 numerator.
        s_base = (pl.program_id(0) * tiles_per_core + k) * tile_s
        row = s_base + jax.lax.broadcasted_iota(jnp.int32, (ts, d), 0)
        hinge = jnp.where(row < s_total, hinge, 0.0)

    hinge_ref[...] += jnp.sum(hinge, axis=0, keepdims=True)      # (1, D)

    # ---- uncentered Gram on the MXU, native-dtype operands, f32 accumulation.
    # TODO(synk): dump bundles to verify this transposed-LHS dot_general does
    # not lower with a per-step vxpose of the (B*ts, D) tile; if it does,
    # present a pre-transposed layout / pl.dot(trans_a) instead.
    x2 = x_nat.reshape(b * ts, d)                                # free collapse
    gram_ref[...] += jax.lax.dot_general(
        x2, x2, (((0,), (0,)), ((), ())),
        preferred_element_type=jnp.float32)                      # (D, D)


def _plan_tile(B, S, D, dtype, tile_s=None):
    """Pick tile_s and the VMEM limit, generation- and dtype-aware."""
    itemsize = jnp.dtype(dtype).itemsize
    sub = {4: 8, 2: 16, 1: 32}.get(itemsize, 8)      # sublane packing stride

    try:
        vmem_cap = int(pltpu.get_tpu_info().vmem_capacity_bytes)
    except Exception:
        vmem_cap = 64 << 20                          # v7x per-core physical (smallest gen)
    vmem_limit = int(min(vmem_cap * 3 // 4, 96 << 20))

    # Per-step footprint model: 2x double-buffered native input slab
    # + ~3 slab-sized f32 temporaries (cast / centered / products)
    # + resident (D,D) + (1,D) f32 output blocks (+ slack).
    # TODO(synk): for very large D (Gram itself approaching VMEM) the Gram
    # output should additionally be blocked over a D-column grid axis.
    fixed = 8 * D * D + 8 * D + (2 << 20)
    budget = max(vmem_limit - fixed, 1 << 20)
    per_s = B * D * (2 * itemsize + 3 * 4)
    max_t = max(sub, (budget // per_s) // sub * sub)

    if tile_s is None:
        def best_divisor(mult):
            best, t, lim = 0, sub, min(S, max_t)
            while t <= lim:
                if S % (mult * t) == 0:
                    best = t
                t += sub
            return best

        t2 = best_divisor(2)                         # enables the 2-core split
        t1 = best_divisor(1)
        if S <= max_t:
            t1 = max(t1, S)                          # whole-S block is always layout-legal
        if t2 and 2 * t2 >= t1:
            tile_s = t2
        elif t1:
            tile_s = t1
        else:
            tile_s = min(max_t, S)                   # ragged; padded + masked in-kernel
    return tile_s, vmem_limit


def vicreg_loss(x, tile_s=None, ncores=None):
    """x: (B, 1, S, D) -> (loss1, loss2) scalars, matching VICRegLoss.forward."""
    x = jnp.squeeze(x, axis=1)                       # (B, S, D)
    B, S, D = x.shape
    if B < 2:
        raise ValueError("VICRegLoss needs batch >= 2 (unbiased variance, ddof=1).")

    tile_s, vmem_limit = _plan_tile(B, S, D, x.dtype, tile_s)
    n_tiles = -(-S // tile_s)                        # cdiv
    s_pad = n_tiles * tile_s
    ragged = s_pad != S
    if ragged:
        # Zero-pad S up to a tile multiple; padded rows are masked in-kernel.
        x = jnp.pad(x, ((0, 0), (0, s_pad - S), (0, 0)))
    if ncores is None:
        ncores = 2 if (n_tiles >= 2 and n_tiles % 2 == 0) else 1
    assert n_tiles % ncores == 0, (n_tiles, ncores)
    tiles_per_core = n_tiles // ncores

    kernel = functools.partial(_vicreg_kernel,
                               tiles_per_core=tiles_per_core,
                               tile_s=tile_s, s_total=S, ragged=ragged)

    itemsize = jnp.dtype(x.dtype).itemsize
    cost = pl.CostEstimate(
        flops=2 * B * s_pad * D * D + 8 * B * s_pad * D,
        transcendentals=s_pad * D,
        bytes_accessed=B * s_pad * D * itemsize + ncores * (D * D + D) * 4,
    )

    hinge_p, gram_p = pl.pallas_call(
        kernel,
        grid=(ncores, tiles_per_core),
        out_shape=(jax.ShapeDtypeStruct((ncores, 1, D), jnp.float32),
                   jax.ShapeDtypeStruct((ncores, D, D), jnp.float32)),
        in_specs=[pl.BlockSpec((B, tile_s, D),
                               lambda p, k: (0, p * tiles_per_core + k, 0))],
        out_specs=(pl.BlockSpec((None, 1, D), lambda p, k: (p, 0, 0)),
                   pl.BlockSpec((None, D, D), lambda p, k: (p, 0, 0))),
        compiler_params=pltpu.CompilerParams(
            dimension_semantics=("parallel", "arbitrary"),
            vmem_limit_bytes=vmem_limit),
        cost_estimate=cost,
    )(x)

    # ---- tiny O(D^2) epilogue: combine per-core partials into the scalars ----
    hinge_total = jnp.sum(hinge_p)                   # over cores and D
    gram = jnp.sum(gram_p, axis=0)                   # (D, D)
    loss1 = hinge_total / float(S * D)
    cov = gram / float(B * S - 1)
    off = cov - jnp.diag(jnp.diagonal(cov))          # zero diag, then square (as in ref)
    loss2 = jnp.sum(off * off) / float(D)
    return loss1, loss2


def _reference(x):
    """Pure-JAX mirror of the PyTorch forward for a correctness check."""
    x = jnp.squeeze(x, axis=1)
    B, S, D = x.shape
    x1 = x.reshape(B, S * D)
    x1 = x1 - x1.mean(axis=0)
    std = jnp.sqrt(x1.var(axis=0, ddof=1) + EPS)
    loss1 = jnp.mean(jax.nn.relu(1.0 - std))
    x2 = x.reshape(B * S, D)
    cov = (x2.T @ x2) / (x2.shape[0] - 1)
    off = cov - jnp.diag(jnp.diag(cov))
    loss2 = jnp.sum(off ** 2) / D
    return loss1, loss2


if __name__ == "__main__":
    # (batch=2, channel=1, seq=8, hidden=32) — matches x.squeeze(1) -> 3D.
    x = jax.random.normal(jax.random.PRNGKey(0), (2, 1, 8, 32), dtype=jnp.float32)
    l1, l2 = vicreg_loss(x)
    jax.block_until_ready((l1, l2))
    r1, r2 = _reference(x)
    assert np.allclose(np.asarray(l1), np.asarray(r1), rtol=1e-5, atol=1e-5), (l1, r1)
    assert np.allclose(np.asarray(l2), np.asarray(r2), rtol=1e-4, atol=1e-5), (l2, r2)

    # Multi-tile + two-core-split accumulator path: grid = (2, 2).
    xb = jax.random.normal(jax.random.PRNGKey(1), (2, 1, 64, 128), dtype=jnp.float32)
    lb1, lb2 = vicreg_loss(xb, tile_s=16)
    jax.block_until_ready((lb1, lb2))
    rb1, rb2 = _reference(xb)
    assert np.allclose(np.asarray(lb1), np.asarray(rb1), rtol=1e-4, atol=1e-4), (lb1, rb1)
    assert np.allclose(np.asarray(lb2), np.asarray(rb2), rtol=1e-4, atol=1e-4), (lb2, rb2)

    # Ragged-S path: S=40 with tile_s=16 -> 3 tiles, last tile zero-padded + masked.
    xr = jax.random.normal(jax.random.PRNGKey(2), (4, 1, 40, 32), dtype=jnp.float32)
    lr1, lr2 = vicreg_loss(xr, tile_s=16)
    jax.block_until_ready((lr1, lr2))
    rr1, rr2 = _reference(xr)
    assert np.allclose(np.asarray(lr1), np.asarray(rr1), rtol=1e-4, atol=1e-4), (lr1, rr1)
    assert np.allclose(np.asarray(lr2), np.asarray(rr2), rtol=1e-4, atol=1e-4), (lr2, rr2)

    print("KERNEL_OK")
</pallas_src>

<mosaic_0001>
module attributes {stable_mosaic.version = 11 : i64} {
  func.func @_vicreg_kernel(%arg0: i32, %arg1: i32, %arg2: memref<2x8x32xf32, #tpu.memory_space<vmem>>, %arg3: memref<1x1x32xf32, #tpu.memory_space<vmem>>, %arg4: memref<1x32x32xf32, #tpu.memory_space<vmem>>) attributes {dimension_semantics = [#tpu.dimension_semantics<parallel>, #tpu.dimension_semantics<arbitrary>], iteration_bounds = array<i64: 1, 1>, scalar_prefetch = 0 : i64, scratch_operands = 0 : i64, tpu.core_type = #tpu.core_type<tc>, window_params = [{transform_indices = @transform_0, window_bounds = array<i64: 2, 8, 32>}, {transform_indices = @transform_1, window_bounds = array<i64: 1, 1, 32>}, {transform_indices = @transform_2, window_bounds = array<i64: 1, 32, 32>}]} {
    %c0_i32 = arith.constant 0 : i32
    %0 = arith.cmpi eq, %arg1, %c0_i32 : i32
    %1 = arith.extui %0 : i1 to i32
    %c0_i32_0 = arith.constant 0 : i32
    %2 = arith.cmpi ne, %1, %c0_i32_0 : i32
    scf.if %2 {
      %cst_23 = arith.constant 0.000000e+00 : f32
      %37 = vector.broadcast %cst_23 : f32 to vector<1x32xf32>
      %c0_24 = arith.constant 0 : index
      %c0_25 = arith.constant 0 : index
      %c0_26 = arith.constant 0 : index
      %38 = vector.load %arg3[%c0_24, %c0_25, %c0_26] : memref<1x1x32xf32, #tpu.memory_space<vmem>>, vector<1x1x32xf32>
      %39 = vector.shape_cast %38 : vector<1x1x32xf32> to vector<1x32xf32>
      %40 = vector.shape_cast %37 : vector<1x32xf32> to vector<1x1x32xf32>
      tpu.vector_store %arg3[%c0_24, %c0_25, %c0_26], %40 {strides = array<i32>} : memref<1x1x32xf32, #tpu.memory_space<vmem>>, vector<1x1x32xf32>,
      %cst_27 = arith.constant 0.000000e+00 : f32
      %41 = vector.broadcast %cst_27 : f32 to vector<32x32xf32>
      %c0_28 = arith.constant 0 : index
      %c0_29 = arith.constant 0 : index
      %c0_30 = arith.constant 0 : index
      %42 = vector.load %arg4[%c0_28, %c0_29, %c0_30] : memref<1x32x32xf32, #tpu.memory_space<vmem>>, vector<1x32x32xf32>
      %43 = vector.shape_cast %42 : vector<1x32x32xf32> to vector<32x32xf32>
      %44 = vector.shape_cast %41 : vector<32x32xf32> to vector<1x32x32xf32>
      tpu.vector_store %arg4[%c0_28, %c0_29, %c0_30], %44 {strides = array<i32>} : memref<1x32x32xf32, #tpu.memory_space<vmem>>, vector<1x32x32xf32>,
    } else {
    }
    %c0 = arith.constant 0 : index
    %c0_1 = arith.constant 0 : index
    %c0_2 = arith.constant 0 : index
    %3 = vector.load %arg2[%c0, %c0_1, %c0_2] : memref<2x8x32xf32, #tpu.memory_space<vmem>>, vector<2x8x32xf32>
    %cst = arith.constant dense<0.000000e+00> : vector<8x32xf32>
    %4 = vector.multi_reduction <add>, %3, %cst [0] : vector<2x8x32xf32> to vector<8x32xf32>
    %5 = vector.shape_cast %4 : vector<8x32xf32> to vector<1x8x32xf32>
    %cst_3 = arith.constant 5.000000e-01 : f32
    %6 = vector.broadcast %cst_3 : f32 to vector<1x8x32xf32>
    %7 = arith.mulf %5, %6 : vector<1x8x32xf32>
    %8 = vector.broadcast %7 : vector<1x8x32xf32> to vector<2x8x32xf32>
    %9 = arith.subf %3, %8 : vector<2x8x32xf32>
    %10 = arith.mulf %9, %9 : vector<2x8x32xf32>
    %cst_4 = arith.constant dense<0.000000e+00> : vector<8x32xf32>
    %11 = vector.multi_reduction <add>, %10, %cst_4 [0] : vector<2x8x32xf32> to vector<8x32xf32>
    %cst_5 = arith.constant 1.000000e+00 : f32
    %12 = vector.broadcast %cst_5 : f32 to vector<8x32xf32>
    %13 = arith.mulf %11, %12 : vector<8x32xf32>
    %cst_6 = arith.constant 9.99999997E-7 : f32
    %14 = vector.broadcast %cst_6 : f32 to vector<8x32xf32>
    %15 = arith.addf %13, %14 : vector<8x32xf32>
    %16 = math.sqrt %15 : vector<8x32xf32>
    %cst_7 = arith.constant 1.000000e+00 : f32
    %17 = vector.broadcast %cst_7 : f32 to vector<8x32xf32>
    %18 = arith.subf %17, %16 : vector<8x32xf32>
    %cst_8 = arith.constant 0.000000e+00 : f32
    %19 = vector.broadcast %cst_8 : f32 to vector<8x32xf32>
    %20 = arith.maximumf %18, %19 : vector<8x32xf32>
    %c0_9 = arith.constant 0 : index
    %c0_10 = arith.constant 0 : index
    %c0_11 = arith.constant 0 : index
    %21 = vector.load %arg3[%c0_9, %c0_10, %c0_11] : memref<1x1x32xf32, #tpu.memory_space<vmem>>, vector<1x1x32xf32>
    %22 = vector.shape_cast %21 : vector<1x1x32xf32> to vector<1x32xf32>
    %cst_12 = arith.constant dense<0.000000e+00> : vector<32xf32>
    %23 = vector.multi_reduction <add>, %20, %cst_12 [0] : vector<8x32xf32> to vector<32xf32>
    %24 = vector.shape_cast %23 : vector<32xf32> to vector<1x32xf32>
    %25 = arith.addf %22, %24 : vector<1x32xf32>
    %c0_13 = arith.constant 0 : index
    %c0_14 = arith.constant 0 : index
    %c0_15 = arith.constant 0 : index
    %26 = vector.load %arg3[%c0_13, %c0_14, %c0_15] : memref<1x1x32xf32, #tpu.memory_space<vmem>>, vector<1x1x32xf32>
    %27 = vector.shape_cast %26 : vector<1x1x32xf32> to vector<1x32xf32>
    %28 = vector.shape_cast %25 : vector<1x32xf32> to vector<1x1x32xf32>
    tpu.vector_store %arg3[%c0_13, %c0_14, %c0_15], %28 {strides = array<i32>} : memref<1x1x32xf32, #tpu.memory_space<vmem>>, vector<1x1x32xf32>,
    %29 = vector.shape_cast %3 : vector<2x8x32xf32> to vector<16x32xf32>
    %c0_16 = arith.constant 0 : index
    %c0_17 = arith.constant 0 : index
    %c0_18 = arith.constant 0 : index
    %30 = vector.load %arg4[%c0_16, %c0_17, %c0_18] : memref<1x32x32xf32, #tpu.memory_space<vmem>>, vector<1x32x32xf32>
    %31 = vector.shape_cast %30 : vector<1x32x32xf32> to vector<32x32xf32>
    %cst_19 = arith.constant dense<0.000000e+00> : vector<32x32xf32>
    %32 = tpu.matmul %29, %29, %cst_19 {dimension_numbers = #tpu.dot_dimension_numbers<[0], [0], [1], [1], [0, 1, 1, 1], [], []>} : vector<16x32xf32>, vector<16x32xf32>, vector<32x32xf32> -> vector<32x32xf32>
    %33 = arith.addf %31, %32 : vector<32x32xf32>
    %c0_20 = arith.constant 0 : index
    %c0_21 = arith.constant 0 : index
    %c0_22 = arith.constant 0 : index
    %34 = vector.load %arg4[%c0_20, %c0_21, %c0_22] : memref<1x32x32xf32, #tpu.memory_space<vmem>>, vector<1x32x32xf32>
    %35 = vector.shape_cast %34 : vector<1x32x32xf32> to vector<32x32xf32>
    %36 = vector.shape_cast %33 : vector<32x32xf32> to vector<1x32x32xf32>
    tpu.vector_store %arg4[%c0_20, %c0_21, %c0_22], %36 {strides = array<i32>} : memref<1x32x32xf32, #tpu.memory_space<vmem>>, vector<1x32x32xf32>,
    return
  }
  func.func @transform_0(%arg0: i32, %arg1: i32) -> (i32, i32, i32) {
    %c1_i32 = arith.constant 1 : i32
    %0 = arith.muli %arg0, %c1_i32 : i32
    %1 = arith.addi %0, %arg1 : i32
    %c0_i32 = arith.constant 0 : i32
    %c0_i32_0 = arith.constant 0 : i32
    %c0_i32_1 = arith.constant 0 : i32
    return %c0_i32, %1, %c0_i32_0 : i32, i32, i32
  }
  func.func @transform_1(%arg0: i32, %arg1: i32) -> (i32, i32, i32) {
    %c0_i32 = arith.constant 0 : i32
    %c0_i32_0 = arith.constant 0 : i32
    %c0_i32_1 = arith.constant 0 : i32
    return %arg0, %c0_i32, %c0_i32_0 : i32, i32, i32
  }
  func.func @transform_2(%arg0: i32, %arg1: i32) -> (i32, i32, i32) {
    %c0_i32 = arith.constant 0 : i32
    %c0_i32_0 = arith.constant 0 : i32
    %c0_i32_1 = arith.constant 0 : i32
    return %arg0, %c0_i32, %c0_i32_0 : i32, i32, i32
  }
}

</mosaic_0001>

<bundles_post_ra>
// kernel: tpu_custom_call.1
= control target key start
LH: loop header
LB: loop body
LE: loop exit
PB: predicated region body
PF: predicated region fallthrough
CT: control target
= control target key end

     0   :  { %8 = vsyncpa [#allocation3], 0  ;;  %s431_s0 = inlined_call_operand.hbm [shape: f32[2,8,32], index: 0, kind: input, shape index: {}]   ;;  %s432_s1 = inlined_call_operand.hbm [shape: f32[1,1,32], index: 1, kind: output, shape index: {0}]   ;;  %s433_s2 = inlined_call_operand.hbm [shape: f32[1,32,32], index: 2, kind: output, shape index: {1}]  }
   0x1   :  { %9 = vsyncpa [#allocation4], 0 }
   0x2   :  { %10 = vsyncpa [#allocation7], 0  ;;  %s355_s9 = smov [#allocation2]   ;;  %s283_s13 = scalar_lea.hbm %s431_s0, 256 }
   0x3   :  { %s19_s10 = sshll.u32 %s355_s9, 4  ;;  %p284_p0 = scmp.ne.s32.totalorder %s431_s0, %s283_s13  ;;  %s20_s10 = int_to_ptr.vmem [resolvable:$true] %s19_s10 }
   0x4   :  { %p287_p1 = scmp.lt.u32.totalorder %s283_s13, %s431_s0 }
   0x6   :  { %p289_p2 = pnand %p287_p1, %p284_p0 }
   0x8   :  { %292 = shalt.err (!%p289_p2)
}
   0x9   :  { %s293_s18 = scalar_lea.vmem %s20_s10, 256  ;;  %p298_p4 = scmp.lt.s32.totalorder %s20_s10, %s20_s10 }
   0xa   :  { %p294_p3 = scmp.ne.s32.totalorder %s20_s10, %s293_s18  ;;  %p299_p5 = scmp.lt.s32.totalorder %s293_s18, %s293_s18 }
   0xc   :  { %p300_p6 = por %p299_p5, %p298_p4 }
   0xe   :  { %p301_p7 = pnand %p300_p6, %p294_p3 }
  0x10   :  { %304 = shalt.err (!%p301_p7)
}
  0x11   :  { %s356_s19 = smov 128   ;;  %s357_s20 = smov 8  }
  0x12   :  { %25 = dma.hbm_to_vmem [thread:$0]  %s431_s0, 256, %s20_s10, [#allocation3], %s356_s19, %s356_s19, %s357_s20  }
  0x13   :  { %349 = dma.done.wait [#allocation3], 256  }
  0x14   :  { %350 = vsyncadd [#allocation3], 4294967040  ;;  %vm36_vm0 = vcmask 261120   ;;  %v41_v0 = vld [vmem:[#allocation2] sm:$0xff]  ;;  %v42_v1 = vld [vmem:[#allocation2 + $0x8] sm:$0xff]  ;;  %v358_v14 = vmov 0.0  }
  0x15   :  { %80 = vxpose.xlu0.b32.start [1/2] (short) (narrow) %v41_v0, 32  ;;  %v44_v2 = vsel %vm36_vm0, %v41_v0, 0.0  ;;  %v45_v3 = vsel %vm36_vm0, %v42_v1, 0.0  ;;  %v269_v4 = vpack.c.bf16 %v42_v1, %v41_v0  ;;  %38 = vst.msk [vmem:[#allocation6 + $0x8] sm:$0xff] %vm36_vm0, %v358_v14  ;;  %37 = vst.msk [vmem:[#allocation6] sm:$0xff] %vm36_vm0, %v358_v14  ;;  %vm112_vm1 = vcmask 130048  }
  0x16   :  { %v46_v5 = vadd.f32 %v45_v3, %v44_v2  ;;  %39 = vst.msk [vmem:[#allocation6 + $0x10] sm:$0xff] %vm36_vm0, %v358_v14  ;;  %40 = vst.msk [vmem:[#allocation6 + $0x18] sm:$0xff] %vm36_vm0, %v358_v14  ;;  %vm34_vm4 = vcmask 253952   ;;  %s359_s0 = smov [#allocation5]  }
  0x17   :  { %270 = vmatprep.subr.bf16.mxu0 %v269_v4  ;;  %273 = vmatprep.subr.bf16.mxu1 %v269_v4  ;;  %35 = vst.msk [vmem:[#allocation5] sm:$0x1] %vm34_vm4, %v358_v14  ;;  %s224_s23 = sshll.u32 %s359_s0, 4  ;;  %s225_s23 = int_to_ptr.vmem [resolvable:$true] %s224_s23 }
  0x18   :  { %v47_v6 = vmul.f32 0.5, %v46_v5  ;;  %272 = vmatpush3.bf16.msra.mxu0 %v269_v4  ;;  %274 = vmatpush3.bf16.msra.mxu1 %v269_v4  ;;  %s305_s24 = scalar_lea.vmem %s225_s23, 16  ;;  %s309_s25 = scalar_lea.vmem %s225_s23, 32 }
  0x19   :  { %81 = vxpose.xlu0.b32.end [2/2] (short) (narrow) %v42_v1, 32  ;;  %p306_p8 = scmp.ne.s32.totalorder %s225_s23, %s305_s24  ;;  %p310_p9 = scmp.lt.s32.totalorder %s225_s23, %s225_s23 }
  0x1a   :  { %v48_v7 = vsub.f32 %v41_v0, %v47_v6  ;;  %v49_v8 = vsub.f32 %v42_v1, %v47_v6  ;;  %p311_p10 = scmp.lt.s32.totalorder %s309_s25, %s305_s24 }
  0x1c   :  { %v50_v9 = vmul.f32 %v48_v7, %v48_v7  ;;  %v51_v10 = vmul.f32 %v49_v8, %v49_v8  ;;  %p312_p11 = por %p311_p10, %p310_p9 }
  0x1e   :  { %v52_v11 = vsel %vm36_vm0, %v50_v9, 0.0  ;;  %v53_v12 = vsel %vm36_vm0, %v51_v10, 0.0  ;;  %v65_v34 = vld [vmem:[#allocation5] sm:$0x1]  ;;  %p313_p12 = pnand %p312_p11, %p306_p8 }
  0x1f   :  { %v54_v13 = vadd.f32 %v53_v12, %v52_v11 }
  0x21   :  { %v55_v19 = vadd.f32 1e-06, %v54_v13 }
  0x23   :  { %281 = vrsqrt.f32 %v55_v19  ;;  %vm58_vm2 = vcmp.eq.f32.partialorder %v55_v19, inf  ;;  %v61_v22 = vand.u32 2147483648, %v55_v19  ;;  %vm60_vm3 = vcmp.eq.f32.partialorder %v55_v19, 0.0 }
  0x2d   :  { %v282_v20 = vpop.eup %281 }
  0x2e   :  { %v57_v21 = vmul.f32 %v282_v20, %v55_v19 }
  0x30   :  { %v59_v23 = vsel %vm58_vm2, %v55_v19, %v57_v21 }
  0x31   :  { %v62_v24 = vsel %vm60_vm3, %v61_v22, %v59_v23 }
  0x32   :  { %v63_v25 = vsub.f32 1.0, %v62_v24 }
  0x34   :  { %v64_v26 = vmax.f32 %v63_v25, 0.0 }
  0x36   :  { %v66_v27 = vsel %vm36_vm0, %v64_v26, 0.0 }
  0x37   :  { %v67_v28 = vrot.slane %v66_v27, 4 }
  0x39   :  { %v68_v29 = vadd.f32 %v67_v28, %v66_v27 }
  0x3b   :  { %v69_v30 = vrot.slane %v68_v29, 2 }
  0x3d   :  { %v70_v31 = vadd.f32 %v69_v30, %v68_v29 }
  0x3f   :  { %v71_v32 = vrot.slane %v70_v31, 1 }
  0x41   :  { %v72_v33 = vadd.f32 %v71_v32, %v70_v31 }
  0x43   :  { %v73_v35 = vadd.f32 %v72_v33, %v65_v34 }
  0x45   :  { %75 = vst.msk [vmem:[#allocation5] sm:$0x1] %vm34_vm4, %v73_v35 }
  0x95   :  { %v96_v15 = vpop.trf.xlu0 }
  0x96   :  { %263 = vmatprep.mubr.msk.f32.mxu0 %vm112_vm1, %v96_v15 }
  0x99   :  { %v97_v16 = vpop.trf.xlu0 }
  0x9a   :  { %264 = vmatmul.mubr.msk.f32.vlgmr.msra.gmra.mrb[0].mxu0 %vm112_vm1, %v97_v16 }
  0x9d   :  { %v98_v17 = vpop.trf.xlu0 }
  0x9e   :  { %266 = vmatprep.mubr.msk.f32.mxu1 %vm112_vm1, %v98_v17 }
  0xa1   :  { %v99_v18 = vpop.trf.xlu0 }
  0xa2   :  { %267 = vmatmul.mubr.msk.f32.vlgmr.msra.gmra.mrb[0].mxu1 %vm112_vm1, %v99_v18 }
  0xa3   :  { %316 = shalt.err (!%p313_p12)
}
  0xa4   :  { %s317_s28 = scalar_lea.hbm %s432_s1, 16 }
  0xa5   :  { %p318_p13 = scmp.ne.s32.totalorder %s432_s1, %s317_s28  ;;  %p321_p0 = scmp.lt.u32.totalorder %s317_s28, %s432_s1 }
  0xa7   :  { %p323_p1 = pnand %p321_p0, %p318_p13 }
  0xa9   :  { %326 = shalt.err (!%p323_p1)
}
  0xaa   :  { %227 = dma.vmem_to_hbm [thread:$0]  %s225_s23, 16, %s432_s1, [#allocation4]   ;;  %v77_v36 = vld [vmem:[#allocation6 + $0x8] sm:$0xff]  ;;  %v76_v37 = vld [vmem:[#allocation6] sm:$0xff]  ;;  %v79_v42 = vld [vmem:[#allocation6 + $0x18] sm:$0xff] }
  0xab   :  { %v78_v43 = vld [vmem:[#allocation6 + $0x10] sm:$0xff]  ;;  %s360_s7 = smov [#allocation6]  }
  0xac   :  { %s233_s8 = sshll.u32 %s360_s7, 4  ;;  %s234_s8 = int_to_ptr.vmem [resolvable:$true] %s233_s8 }
  0xad   :  { %s327_s1 = scalar_lea.vmem %s234_s8, 512  ;;  %p332_p3 = scmp.lt.s32.totalorder %s234_s8, %s234_s8 }
  0xae   :  { %p328_p2 = scmp.ne.s32.totalorder %s234_s8, %s327_s1  ;;  %p333_p4 = scmp.lt.s32.totalorder %s327_s1, %s327_s1 }
  0xb0   :  { %p334_p5 = por %p333_p4, %p332_p3 }
  0xb2   :  { %p335_p6 = pnand %p334_p5, %p328_p2 }
 0x16d   :  { %v265_v38 = vpop.f32.mrb[0].mxu0 }
 0x16e   :  { %v211_v39 = vadd.f32 %v265_v38, %v77_v36  ;;  %v191_v40 = vpop.f32.mrb[1].mxu0 }
 0x16f   :  { %v210_v41 = vadd.f32 %v191_v40, %v76_v37 }
 0x170   :  { %215 = vst.msk [vmem:[#allocation6 + $0x8] sm:$0xff] %vm36_vm0, %v211_v39 }
 0x171   :  { %214 = vst.msk [vmem:[#allocation6] sm:$0xff] %vm36_vm0, %v210_v41 }
 0x175   :  { %v268_v44 = vpop.f32.mrb[0].mxu1 }
 0x176   :  { %v213_v45 = vadd.f32 %v268_v44, %v79_v42  ;;  %v201_v46 = vpop.f32.mrb[1].mxu1 }
 0x177   :  { %v212_v47 = vadd.f32 %v201_v46, %v78_v43 }
 0x178   :  { %217 = vst.msk [vmem:[#allocation6 + $0x18] sm:$0xff] %vm36_vm0, %v213_v45 }
 0x179   :  { %216 = vst.msk [vmem:[#allocation6 + $0x10] sm:$0xff] %vm36_vm0, %v212_v47 }
 0x17a   :  { %338 = shalt.err (!%p335_p6)
}
 0x17b   :  { %s339_s11 = scalar_lea.hbm %s433_s2, 512 }
 0x17c   :  { %p340_p7 = scmp.ne.s32.totalorder %s433_s2, %s339_s11  ;;  %p343_p8 = scmp.lt.u32.totalorder %s339_s11, %s433_s2 }
 0x17e   :  { %p345_p9 = pnand %p343_p8, %p340_p7 }
 0x180   :  { %348 = shalt.err (!%p345_p9)
}
 0x181   :  { %239 = dma.vmem_to_hbm [thread:$0]  %s234_s8, 512, %s433_s2, [#allocation7], %s356_s19, %s356_s19, %s357_s20  }
 0x182   :  { %351 = dma.done.wait [#allocation4], 16  }
 0x183   :  { %352 = vsyncadd [#allocation4], 4294967280 }
 0x184   :  { %353 = dma.done.wait [#allocation7], 512  }
 0x185   :  { %354 = vsyncadd [#allocation7], 4294966784 }
 0x186   :  { %246 = vsyncpa [#allocation3], 1 }
 0x187   :  { %247 = vsyncpa [#allocation4], 1 }
 0x188   :  { %248 = vsyncpa [#allocation7], 1 }

</bundles_post_ra>
